<compile_context>
chip_gen: v6e
topology: v6e:2x2x1
jax: 0.10.0
libtpu: 0.0.40
codegen_flags: <defaults>
</compile_context>

<pallas_src>
import functools

import jax
import jax.numpy as jnp
from jax import lax
from jax.experimental import pallas as pl
from jax.experimental.pallas import tpu as pltpu

_LANE = 128
_SUB = 8


def _round_up(a, m):
    return -(-a // m) * m


def _vmem_config():
    """(scoped_vmem_limit_bytes, target_block_bytes), generation-aware."""
    try:
        cap = int(pltpu.get_tpu_info().vmem_capacity_bytes)
    except Exception:
        cap = 64 * 1024 * 1024          # conservative fallback (v7x per-TC)
    # Leave headroom for compiler-internal scratch; v5e/v6e -> 64 MiB scoped,
    # v7x (64 MiB physical) -> 48 MiB scoped.
    limit = max(16 * 1024 * 1024, min(cap - 16 * 1024 * 1024, 64 * 1024 * 1024))
    # Higher-HBM-BW chips (v7x) want bigger blocks to amortize the ~0.35 us
    # per-grid-step overhead; cap by a fraction of the scoped limit so the
    # double-buffered in+out footprint of pass 2 always fits.
    target = 4 * 1024 * 1024 if cap <= 64 * 1024 * 1024 else 2 * 1024 * 1024
    target = min(target, limit // 8)
    return limit, target


def _choose_tiles(rows, hw, target_bytes):
    """Byte-aware (row_block, col_block, lane_width) for a (rows, hw) slab.

    Sizing is done in f32 bytes (compute dtype).  col_block is a multiple of
    the lane width; row_block a multiple of 8 (sublanes).
    """
    lane_w = _LANE if hw >= _LANE else hw
    max_t = (hw // lane_w) * lane_w            # >= lane_w, multiple of lane_w
    rows_p = _round_up(rows, _SUB)
    # Moderate column tile first (keeps the in-kernel chunk loop short) ...
    t = min(max_t, 8 * lane_w)
    # ... then add rows until the byte target is reached.
    r = max(_SUB, ((target_bytes // (t * 4)) // _SUB) * _SUB)
    r = min(r, rows_p)
    # If every row already fits in one block, widen columns instead.
    if r >= rows_p:
        r = rows_p
        t_want = ((target_bytes // (r * 4)) // lane_w) * lane_w
        t = max(t, min(max_t, t_want))
    return r, t, lane_w


# ----------------------------------------------------------------------------
# Fused resident kernel (whole activation lives in VMEM): 1 read + 1 write.
# ----------------------------------------------------------------------------
def _bn_resident_kernel(x_ref, g_ref, b_ref, o_ref, *, eps, inv_count):
    x = x_ref[...].astype(jnp.float32)                        # (n, c, hw)
    s = jnp.sum(jnp.sum(x, axis=0), axis=1, keepdims=True)    # (c, 1)
    q = jnp.sum(jnp.sum(x * x, axis=0), axis=1, keepdims=True)
    mean = s * inv_count
    var = jnp.maximum(q * inv_count - mean * mean, 0.0)
    scale = g_ref[...] * lax.rsqrt(var + eps)                 # (c, 1)
    shift = b_ref[...] - mean * scale
    o_ref[...] = (x * scale[None] + shift[None]).astype(o_ref.dtype)


# ----------------------------------------------------------------------------
# Tiled pass 1: per-row partial sum / sumsq, accumulated with elementwise adds
# into lane-wide (row_block, lane_w) output blocks (resident across the
# "arbitrary" column axis).  No cross-lane reductions in the hot loop.
# ----------------------------------------------------------------------------
def _bn_partial_stats_kernel(x_ref, psum_ref, psq_ref, *, hw, lane_w,
                             has_col_tail):
    ti = pl.program_id(1)
    r, t = x_ref.shape
    n_chunks = t // lane_w

    @pl.when(ti == 0)
    def _():
        psum_ref[...] = jnp.zeros_like(psum_ref)
        psq_ref[...] = jnp.zeros_like(psq_ref)

    def accumulate(j):
        off = j * lane_w
        if not isinstance(off, int):
            off = pl.multiple_of(off, lane_w)
        xc = x_ref[:, pl.ds(off, lane_w)].astype(jnp.float32)   # (r, lane_w)
        if has_col_tail:
            col = lax.broadcasted_iota(jnp.int32, (r, lane_w), 1) + (ti * t + off)
            xc = jnp.where(col < hw, xc, 0.0)
        psum_ref[...] += xc
        psq_ref[...] += xc * xc

    if n_chunks <= 8:
        for j in range(n_chunks):
            accumulate(j)
    else:
        @pl.loop(0, n_chunks)
        def _(j):
            accumulate(j)


# ----------------------------------------------------------------------------
# Tiled pass 2: y = x * scale[row] + shift[row]  (one FMA per element).
# ----------------------------------------------------------------------------
def _bn_apply_kernel(x_ref, scale_ref, shift_ref, o_ref):
    x = x_ref[...].astype(jnp.float32)
    o_ref[...] = (x * scale_ref[...] + shift_ref[...]).astype(o_ref.dtype)


def batchnorm2d_train(x_nchw, gamma, beta, eps=1e-5, force_tiled=False):
    """Train-mode BatchNorm2d.  x: (N, C, H, W); gamma/beta: (C,)."""
    n, c, h, w = x_nchw.shape
    hw = h * w
    rows = n * c
    count = n * hw
    inv_count = 1.0 / count
    out_dtype = x_nchw.dtype

    limit, target = _vmem_config()
    g2 = gamma.reshape(c, 1).astype(jnp.float32)
    b2 = beta.reshape(c, 1).astype(jnp.float32)

    elems = n * c * hw
    resident_bytes = elems * (x_nchw.dtype.itemsize
                              + jnp.dtype(out_dtype).itemsize + 12)
    if not force_tiled and resident_bytes + (8 << 20) <= limit:
        # ---- fused, x-resident path: x read from HBM once, written once ----
        x3 = x_nchw.reshape(n, c, hw)                # free reshape, NCHW layout
        out3 = pl.pallas_call(
            functools.partial(_bn_resident_kernel, eps=eps, inv_count=inv_count),
            out_shape=jax.ShapeDtypeStruct((n, c, hw), out_dtype),
            compiler_params=pltpu.CompilerParams(vmem_limit_bytes=limit),
        )(x3, g2, b2)
        return out3.reshape(n, c, h, w)

    # ---- tiled two-pass path over the row-flattened (N*C, H*W) view --------
    x2 = x_nchw.reshape(rows, hw)
    r, t, lane_w = _choose_tiles(rows, hw, target)
    num_rb = pl.cdiv(rows, r)
    num_t = pl.cdiv(hw, t)
    has_col_tail = (hw % t) != 0

    psum, psq = pl.pallas_call(
        functools.partial(_bn_partial_stats_kernel, hw=hw, lane_w=lane_w,
                          has_col_tail=has_col_tail),
        out_shape=(jax.ShapeDtypeStruct((rows, lane_w), jnp.float32),
                   jax.ShapeDtypeStruct((rows, lane_w), jnp.float32)),
        grid_spec=pltpu.PrefetchScalarGridSpec(
            num_scalar_prefetch=0,
            grid=(num_rb, num_t),
            in_specs=[pl.BlockSpec((r, t), lambda ri, ti: (ri, ti))],
            out_specs=(pl.BlockSpec((r, lane_w), lambda ri, ti: (ri, 0)),
                       pl.BlockSpec((r, lane_w), lambda ri, ti: (ri, 0))),
        ),
        compiler_params=pltpu.CompilerParams(
            dimension_semantics=("parallel", "arbitrary"),
            vmem_limit_bytes=limit),
    )(x2)

    # Tiny per-channel finalize in plain JAX: keeps pass 1 free of a
    # last-iteration pl.when (so its parallel axis can shard across v7x cores).
    s_c = psum.reshape(n, c, lane_w).sum(axis=(0, 2))
    q_c = psq.reshape(n, c, lane_w).sum(axis=(0, 2))
    mean = s_c * inv_count
    # TODO(synk): E[x^2]-E[x]^2 is cancellation-prone for inputs with a large
    # mean offset; a centered second stats pass would cost one extra read of x.
    var = jnp.maximum(q_c * inv_count - mean * mean, 0.0)
    scale_c = gamma.astype(jnp.float32) * lax.rsqrt(var + eps)
    shift_c = beta.astype(jnp.float32) - mean * scale_c
    scale_r = jnp.broadcast_to(scale_c[None, :], (n, c)).reshape(rows, 1)
    shift_r = jnp.broadcast_to(shift_c[None, :], (n, c)).reshape(rows, 1)

    out2 = pl.pallas_call(
        _bn_apply_kernel,
        out_shape=jax.ShapeDtypeStruct((rows, hw), out_dtype),
        grid_spec=pltpu.PrefetchScalarGridSpec(
            num_scalar_prefetch=0,
            grid=(num_rb, num_t),
            in_specs=[pl.BlockSpec((r, t), lambda ri, ti: (ri, ti)),
                      pl.BlockSpec((r, 1), lambda ri, ti: (ri, 0)),
                      pl.BlockSpec((r, 1), lambda ri, ti: (ri, 0))],
            out_specs=pl.BlockSpec((r, t), lambda ri, ti: (ri, ti)),
        ),
        compiler_params=pltpu.CompilerParams(
            dimension_semantics=("parallel", "parallel"),
            vmem_limit_bytes=limit),
    )(x2, scale_r, shift_r)

    return out2.reshape(n, c, h, w)


# ----------------------------------------------------------------------------
# IdentityPadding forward
# ----------------------------------------------------------------------------
def identity_padding_forward(x, conv_weight, bn_gamma, bn_beta, stride):
    # The conv output is overwritten immediately in the PyTorch forward and
    # has no side effects -> dead compute, elided.
    # TODO(synk): BatchNorm running_mean/running_var buffer updates (training
    # side-state) are not produced; they do not affect the returned tensor.
    del conv_weight, stride
    return batchnorm2d_train(x, bn_gamma, bn_beta)


if __name__ == "__main__":
    # Shapes consistent with the module (in_channels == out_channels so that
    # BatchNorm2d(out_channels)(x) is valid).
    N, C_in, H, W = 2, 4, 16, 16
    C_out, stride = 4, 1

    key = jax.random.PRNGKey(0)
    kx, kw, kx2 = jax.random.split(key, 3)
    x = jax.random.normal(kx, (N, C_in, H, W), dtype=jnp.float32)
    conv_weight = jax.random.normal(kw, (C_out, C_in, 1, 1), dtype=jnp.float32) * 0.1
    bn_gamma = jnp.ones((C_out,), dtype=jnp.float32)
    bn_beta = jnp.zeros((C_out,), dtype=jnp.float32)

    def bn_ref(xx, g, b, eps=1e-5):
        mean = jnp.mean(xx, axis=(0, 2, 3), keepdims=True)
        var = jnp.mean((xx - mean) ** 2, axis=(0, 2, 3), keepdims=True)
        return ((xx - mean) * lax.rsqrt(var + eps)
                * g.reshape(1, -1, 1, 1) + b.reshape(1, -1, 1, 1))

    # 1) small shape -> fused x-resident kernel (1R + 1W of x).
    out = identity_padding_forward(x, conv_weight, bn_gamma, bn_beta, stride)
    out = jax.block_until_ready(out)
    assert out.shape == (N, C_out, H, W)
    assert jnp.max(jnp.abs(out - bn_ref(x, bn_gamma, bn_beta))) < 1e-4

    # 2) exercise the tiled two-pass path (with a ragged spatial tail + the
    #    in-kernel column mask) as well.
    N2, C2, H2, W2 = 2, 8, 20, 20
    x_big = jax.random.normal(kx2, (N2, C2, H2, W2), dtype=jnp.float32)
    g_big = 1.0 + 0.1 * jnp.arange(C2, dtype=jnp.float32)
    b_big = 0.05 * jnp.arange(C2, dtype=jnp.float32)
    out_big = batchnorm2d_train(x_big, g_big, b_big, force_tiled=True)
    out_big = jax.block_until_ready(out_big)
    assert jnp.max(jnp.abs(out_big - bn_ref(x_big, g_big, b_big))) < 1e-4

    print("KERNEL_OK")
</pallas_src>

<mosaic_0001>
module attributes {stable_mosaic.version = 11 : i64} {
  func.func @_bn_resident_kernel(%arg0: memref<2x4x256xf32, #tpu.memory_space<vmem>>, %arg1: memref<4x1xf32, #tpu.memory_space<vmem>>, %arg2: memref<4x1xf32, #tpu.memory_space<vmem>>, %arg3: memref<2x4x256xf32, #tpu.memory_space<vmem>>) attributes {dimension_semantics = [], scalar_prefetch = 0 : i64, scratch_operands = 0 : i64, tpu.core_type = #tpu.core_type<tc>} {
    %c0 = arith.constant 0 : index
    %c0_0 = arith.constant 0 : index
    %c0_1 = arith.constant 0 : index
    %0 = vector.load %arg0[%c0, %c0_0, %c0_1] : memref<2x4x256xf32, #tpu.memory_space<vmem>>, vector<2x4x256xf32>
    %cst = arith.constant dense<0.000000e+00> : vector<4x256xf32>
    %1 = vector.multi_reduction <add>, %0, %cst [0] : vector<2x4x256xf32> to vector<4x256xf32>
    %cst_2 = arith.constant dense<0.000000e+00> : vector<4xf32>
    %2 = vector.multi_reduction <add>, %1, %cst_2 [1] : vector<4x256xf32> to vector<4xf32>
    %3 = vector.shape_cast %2 : vector<4xf32> to vector<4x1xf32>
    %4 = arith.mulf %0, %0 : vector<2x4x256xf32>
    %cst_3 = arith.constant dense<0.000000e+00> : vector<4x256xf32>
    %5 = vector.multi_reduction <add>, %4, %cst_3 [0] : vector<2x4x256xf32> to vector<4x256xf32>
    %cst_4 = arith.constant dense<0.000000e+00> : vector<4xf32>
    %6 = vector.multi_reduction <add>, %5, %cst_4 [1] : vector<4x256xf32> to vector<4xf32>
    %7 = vector.shape_cast %6 : vector<4xf32> to vector<4x1xf32>
    %cst_5 = arith.constant 0.001953125 : f32
    %8 = vector.broadcast %cst_5 : f32 to vector<4x1xf32>
    %9 = arith.mulf %3, %8 : vector<4x1xf32>
    %cst_6 = arith.constant 0.001953125 : f32
    %10 = vector.broadcast %cst_6 : f32 to vector<4x1xf32>
    %11 = arith.mulf %7, %10 : vector<4x1xf32>
    %12 = arith.mulf %9, %9 : vector<4x1xf32>
    %13 = arith.subf %11, %12 : vector<4x1xf32>
    %cst_7 = arith.constant 0.000000e+00 : f32
    %14 = vector.broadcast %cst_7 : f32 to vector<4x1xf32>
    %15 = arith.maximumf %13, %14 : vector<4x1xf32>
    %c0_8 = arith.constant 0 : index
    %c0_9 = arith.constant 0 : index
    %16 = vector.load %arg1[%c0_8, %c0_9] : memref<4x1xf32, #tpu.memory_space<vmem>>, vector<4x1xf32>
    %cst_10 = arith.constant 9.99999974E-6 : f32
    %17 = vector.broadcast %cst_10 : f32 to vector<4x1xf32>
    %18 = arith.addf %15, %17 : vector<4x1xf32>
    %19 = math.rsqrt %18 : vector<4x1xf32>
    %20 = arith.mulf %16, %19 : vector<4x1xf32>
    %c0_11 = arith.constant 0 : index
    %c0_12 = arith.constant 0 : index
    %21 = vector.load %arg2[%c0_11, %c0_12] : memref<4x1xf32, #tpu.memory_space<vmem>>, vector<4x1xf32>
    %22 = arith.mulf %9, %20 : vector<4x1xf32>
    %23 = arith.subf %21, %22 : vector<4x1xf32>
    %24 = vector.shape_cast %20 : vector<4x1xf32> to vector<1x4x1xf32>
    %25 = vector.broadcast %24 : vector<1x4x1xf32> to vector<2x4x256xf32>
    %26 = arith.mulf %0, %25 : vector<2x4x256xf32>
    %27 = vector.shape_cast %23 : vector<4x1xf32> to vector<1x4x1xf32>
    %28 = vector.broadcast %27 : vector<1x4x1xf32> to vector<2x4x256xf32>
    %29 = arith.addf %26, %28 : vector<2x4x256xf32>
    %c0_13 = arith.constant 0 : index
    %c0_14 = arith.constant 0 : index
    %c0_15 = arith.constant 0 : index
    %30 = vector.load %arg3[%c0_13, %c0_14, %c0_15] : memref<2x4x256xf32, #tpu.memory_space<vmem>>, vector<2x4x256xf32>
    tpu.vector_store %arg3[%c0_13, %c0_14, %c0_15], %29 {strides = array<i32>} : memref<2x4x256xf32, #tpu.memory_space<vmem>>, vector<2x4x256xf32>,
    return
  }
}

</mosaic_0001>

<bundles_post_ra>
// kernel: tpu_custom_call.1
= control target key start
LH: loop header
LB: loop body
LE: loop exit
PB: predicated region body
PF: predicated region fallthrough
CT: control target
= control target key end

     0   :  { %8 = vsyncpa [#allocation3], 0  ;;  %s239_s0 = inlined_call_operand.hbm [shape: f32[2,4,256], index: 0, kind: input, shape index: {}]   ;;  %s240_s1 = inlined_call_operand.vmem [shape: f32[4,1], index: 1, kind: input, shape index: {}]   ;;  %s241_s2 = inlined_call_operand.vmem [shape: f32[4,1], index: 2, kind: input, shape index: {}]   ;;  %s242_s3 = inlined_call_operand.hbm [shape: f32[2,4,256], index: 3, kind: output, shape index: {}]  }
   0x1   :  { %9 = vsyncpa [#allocation4], 0  ;;  %s183_s12 = smov [#allocation2]  }
   0x2   :  { %s15_s13 = sshll.u32 %s183_s12, 4  ;;  %s16_s13 = int_to_ptr.vmem [resolvable:$true] %s15_s13 }
   0x3   :  { %s147_s14 = scalar_lea.vmem %s16_s13, 256  ;;  %p152_p1 = scmp.lt.s32.totalorder %s16_s13, %s16_s13 }
   0x4   :  { %p148_p0 = scmp.ne.s32.totalorder %s16_s13, %s147_s14  ;;  %p153_p2 = scmp.lt.s32.totalorder %s147_s14, %s147_s14 }
   0x6   :  { %p154_p3 = por %p153_p2, %p152_p1 }
   0x8   :  { %p155_p4 = pnand %p154_p3, %p148_p0 }
   0xa   :  { %158 = shalt.err (!%p155_p4)
}
   0xb   :  { %s184_s15 = smov 128   ;;  %s185_s16 = smov 8  }
   0xc   :  { %21 = dma.hbm_to_vmem [thread:$0]  %s239_s0, 256, %s16_s13, [#allocation3], %s184_s15, %s184_s15, %s185_s16  }
   0xd   :  { %179 = dma.done.wait [#allocation3], 256  }
   0xe   :  { %180 = vsyncadd [#allocation3], 4294967040  ;;  %vm37_vm0 = vcmask 1043456   ;;  %v29_v0 = vld [vmem:[#allocation2] sm:$0xff]  ;;  %v30_v1 = vld [vmem:[#allocation2 + $0x8] sm:$0xff]  ;;  %v186_v26 = vmov 0   ;;  %v87_v43 = vlaneseq }
   0xf   :  { %v33_v2 = vcombine.high %v29_v0, %v29_v0  ;;  %v34_v3 = vcombine.high %v30_v1, %v30_v1  ;;  %v38_v4 = vsel %vm37_vm0, %v29_v0, 0.0  ;;  %v39_v5 = vsel %vm37_vm0, %v30_v1, 0.0  ;;  %133 = vset.pattern.permute.xlu1 %v186_v26  ;;  %134 = vset.pattern.permute.xlu0 %v186_v26  ;;  %v73_v35 = vld [vmem:[%s240_s1] sm:$0xf]  ;;  %s188_s1 = smov [#allocation5]  }
  0x10   :  { %v40_v6 = vadd.f32 %v39_v5, %v38_v4  ;;  %v49_v7 = vmul.f32 %v29_v0, %v29_v0  ;;  %v50_v8 = vmul.f32 %v30_v1, %v30_v1  ;;  %v77_v38 = vld [vmem:[%s241_s2] sm:$0xf]  ;;  %v187_v41 = vmov 839922192   ;;  %s115_s22 = sshll.u32 %s188_s1, 4  ;;  %s116_s22 = int_to_ptr.vmem [resolvable:$true] %s115_s22 }
  0x11   :  { %v41_v9 = vsel %vm37_vm0, %v33_v2, 0.0  ;;  %v42_v10 = vsel %vm37_vm0, %v34_v3, 0.0  ;;  %v85_v42 = vunpack.c.l.s4 %v187_v41  ;;  %v88_v45 = vshrl.u32 %v87_v43, 7  ;;  %s159_s2 = scalar_lea.vmem %s116_s22, 256  ;;  %p164_p6 = scmp.lt.s32.totalorder %s116_s22, %s116_s22 }
  0x12   :  { %v43_v11 = vadd.f32 %v42_v10, %v41_v9  ;;  %v44_v12 = vsel %vm37_vm0, %v40_v6, 0.0  ;;  %v53_v13 = vcombine.high %v49_v7, %v49_v7  ;;  %v54_v14 = vcombine.high %v50_v8, %v50_v8  ;;  %p160_p5 = scmp.ne.s32.totalorder %s116_s22, %s159_s2  ;;  %p165_p7 = scmp.lt.s32.totalorder %s159_s2, %s159_s2 }
  0x13   :  { %v57_v15 = vsel %vm37_vm0, %v49_v7, 0.0  ;;  %v58_v16 = vsel %vm37_vm0, %v50_v8, 0.0  ;;  %v86_v44 = vunpack.c.0.s8 %v85_v42 }
  0x14   :  { %v45_v17 = vsel %vm37_vm0, %v43_v11, 0.0  ;;  %v59_v18 = vadd.f32 %v58_v16, %v57_v15  ;;  %v60_v19 = vsel %vm37_vm0, %v53_v13, 0.0  ;;  %v61_v20 = vsel %vm37_vm0, %v54_v14, 0.0  ;;  %p166_p8 = por %p165_p7, %p164_p6 }
  0x15   :  { %v46_v21 = vadd.f32 %v45_v17, %v44_v12  ;;  %v62_v22 = vadd.f32 %v61_v20, %v60_v19  ;;  %v89_v46 = vsub.s32 %v86_v44, %v88_v45 }
  0x16   :  { %v63_v23 = vsel %vm37_vm0, %v59_v18, 0.0  ;;  %p167_p9 = pnand %p166_p8, %p160_p5 }
  0x17   :  { %47 = vadd.xlane.f32.xlu0 %v46_v21  ;;  %v64_v24 = vsel %vm37_vm0, %v62_v22, 0.0 }
  0x18   :  { %v65_v25 = vadd.f32 %v64_v24, %v63_v23 }
  0x1b   :  { %66 = vadd.xlane.f32.xlu0 %v65_v25 }
  0xa0   :  { %v48_v27 = vpop.xlane.xlu0 %47 }
  0xa1   :  { %v68_v28 = vmul.f32 0.001953125, %v48_v27 }
  0xa3   :  { %v70_v30 = vmul.f32 %v68_v28, %v68_v28 }
  0xa4   :  { %v67_v29 = vpop.xlane.xlu0 %66 }
  0xa5   :  { %v69_v31 = vmul.f32 0.001953125, %v67_v29 }
  0xa7   :  { %v71_v32 = vsub.f32 %v69_v31, %v70_v30 }
  0xa9   :  { %v72_v33 = vmax.f32 %v71_v32, 0.0 }
  0xab   :  { %v74_v34 = vadd.f32 1e-05, %v72_v33 }
  0xad   :  { %137 = vrsqrt.f32 %v74_v34 }
  0xba   :  { %v138_v36 = vpop.eup %137 }
  0xbb   :  { %v76_v37 = vmul.f32 %v138_v36, %v73_v35 }
  0xbd   :  { %82 = vperm.xlu1 %133, %v76_v37   ;;  %v78_v39 = vmul.f32 %v76_v37, %v68_v28 }
  0xbf   :  { %v79_v40 = vsub.f32 %v77_v38, %v78_v39 }
  0xc1   :  { %96 = vperm.xlu1 %133, %v79_v40  }
 0x138   :  { %v83_v47 = vpop.permute.xlu1 %82 }
 0x139   :  { %v90_v48 = vrot.slane %v83_v47, %v89_v46 }
 0x13b   :  { %v92_v50 = vmul.f32 %v90_v48, %v29_v0  ;;  %v93_v51 = vmul.f32 %v90_v48, %v30_v1 }
 0x13c   :  { %v97_v49 = vpop.permute.xlu1 %96 }
 0x13d   :  { %v104_v52 = vrot.slane %v97_v49, %v89_v46 }
 0x13f   :  { %v106_v53 = vadd.f32 %v104_v52, %v92_v50  ;;  %v107_v54 = vadd.f32 %v104_v52, %v93_v51 }
 0x141   :  { %108 = vst [vmem:[#allocation5] sm:$0xff] %v106_v53  ;;  %109 = vst [vmem:[#allocation5 + $0x8] sm:$0xff] %v107_v54 }
 0x142   :  { %170 = shalt.err (!%p167_p9)
}
 0x143   :  { %121 = dma.vmem_to_hbm [thread:$0]  %s116_s22, 256, %s242_s3, [#allocation4], %s184_s15, %s184_s15, %s185_s16  }
 0x144   :  { %181 = dma.done.wait [#allocation4], 256  }
 0x145   :  { %182 = vsyncadd [#allocation4], 4294967040 }
 0x146   :  { %125 = vsyncpa [#allocation3], 1 }
 0x147   :  { %126 = vsyncpa [#allocation4], 1 }

</bundles_post_ra>
